<compile_context>
chip_gen: v5e
topology: v5e:2x2
jax: 0.10.0
libtpu: 0.0.40
codegen_flags: <defaults>
</compile_context>

<pallas_src>
import math

import jax
import jax.numpy as jnp
from jax.experimental import pallas as pl
from jax.experimental.pallas import tpu as pltpu


def _pe_add_kernel(x_ref, pe_ref, o_ref):
    # x_ref/o_ref: (tb, tn) tile of the flattened (B, S*D) activations.
    # pe_ref:      (1, tn) tile of the flattened PE table, broadcast over the
    #              sublane (batch) rows of the tile (cheap VPU work, hidden
    #              under HBM traffic).
    o_ref[...] = x_ref[...] + pe_ref[...]


def make_positional_encoding(d_model: int, max_len: int = 100) -> jnp.ndarray:
    """One-time parameter setup, mirroring the PyTorch __init__ (odd-D safe)."""
    position = jnp.arange(0, max_len, dtype=jnp.float32)[:, None]          # (max_len, 1)
    div_term = jnp.exp(
        jnp.arange(0, d_model, 2, dtype=jnp.float32)
        * (-math.log(10000.0) / d_model)
    )                                                                       # (ceil(D/2),)
    pe = jnp.zeros((max_len, d_model), dtype=jnp.float32)
    pe = pe.at[:, 0::2].set(jnp.sin(position * div_term))
    # cos branch fills floor(D/2) columns -> slice div_term product for odd D.
    pe = pe.at[:, 1::2].set(jnp.cos(position * div_term)[:, : d_model // 2])
    return pe                                                               # (max_len, D)


def _tpu_generation():
    """Best-effort TPU generation tag ('v7', 'v6', 'v5', 'v4') or None."""
    try:
        kind = jax.devices()[0].device_kind.lower()
    except Exception:
        return None
    for gen in ("v7", "v6", "v5", "v4"):
        if gen in kind:
            return gen
    return None


def _choose_tiles(batch: int, n_lanes: int, itemsize: int,
                  target_block_bytes: int):
    """Pick a (tb, tn) block respecting the (8,128)-or-full-extent rule.

    tn is a multiple of 128 bounded by the byte target (or the exact row
    length when the row is shorter than the budget); tb then grows in
    sublane multiples toward the byte target so short rows still reach
    bandwidth-saturating block sizes. Ragged last blocks (batch/lane dims not
    divisible by the tile) are handled by a cdiv grid + Pallas masking.
    """
    sublane_mult = max(8, 32 // itemsize)            # 8 f32, 16 bf16, 32 int8

    # --- lane (last-dim) tile -------------------------------------------------
    lane_budget = max(128, (target_block_bytes // (sublane_mult * itemsize))
                      // 128 * 128)
    if n_lanes <= lane_budget:
        tn = n_lanes                                  # full lane extent: legal,
                                                      # bounded by the budget
    else:
        tn = lane_budget                              # 128-multiple; ragged last
                                                      # block masked by Pallas

    # --- sublane (batch) tile: grow toward the byte target -------------------
    if batch <= sublane_mult:
        tb = batch                                    # full batch extent: legal
    else:
        want_tb = (target_block_bytes // max(1, tn * itemsize))
        want_tb = max(sublane_mult, (want_tb // sublane_mult) * sublane_mult)
        max_tb = (batch // sublane_mult) * sublane_mult
        tb = int(min(want_tb, max_tb))

    return tb, tn


def _spec(block_shape, index_map, n_buffers: int = 2):
    """BlockSpec, optionally with deeper pipelining (falls back gracefully)."""
    if n_buffers != 2:
        try:
            return pl.BlockSpec(block_shape, index_map,
                                pipeline_mode=pl.Buffered(n_buffers))
        except Exception:  # pipeline_mode / Buffered unavailable in this jax
            pass
    return pl.BlockSpec(block_shape, index_map)


def positional_encoding_forward(x: jnp.ndarray, pe: jnp.ndarray,
                                *, donate_x: bool = False,
                                use_fast_path: bool = True,
                                target_block_bytes: int | None = None
                                ) -> jnp.ndarray:
    """x: (B, S, D); pe: (max_len, D). Returns x + pe[:S] broadcast over batch."""
    B, S, D = x.shape
    N = S * D
    itemsize = jnp.dtype(x.dtype).itemsize

    # Dtype-matched PE slice (halves PE traffic for bf16; PyTorch would keep
    # f32 and promote -- opt out by pre-casting x to f32 if that matters).
    pe_slice = pe[:S].astype(x.dtype)

    # Tiny-input fast path: below ~1 MiB the Pallas dispatch/grid overhead
    # dominates; XLA's fused elementwise add is strictly faster.
    if use_fast_path and B * N * itemsize < (1 << 20):
        return x + pe_slice[None, :, :]

    # Layout plumbing (trace-time bitcasts): lane-dense flattening.
    xf = x.reshape(B, N)
    pef = pe_slice.reshape(1, N)

    gen = _tpu_generation()
    if target_block_bytes is None:
        # 2 MiB on v5-and-older (16 MiB default scoped VMEM), 4 MiB on v6e/v7x.
        target_block_bytes = (2 << 20) if gen in (None, "v4", "v5") else (4 << 20)

    sublane_mult = max(8, 32 // itemsize)
    tb, tn = _choose_tiles(B, N, itemsize, target_block_bytes)

    # v7x: guarantee a shardable (>=2-step) parallel grid for its 2 TensorCores.
    if gen == "v7" and pl.cdiv(N, tn) * pl.cdiv(B, tb) < 2:
        if N >= 256:
            tn = max(128, ((min(tn, N) // 2) // 128) * 128)
        elif tb >= 2 * sublane_mult:
            tb = max(sublane_mult, (tb // 2 // sublane_mult) * sublane_mult)

    grid = (pl.cdiv(N, tn), pl.cdiv(B, tb))   # lane tiles OUTER -> pe stays resident

    # Deeper input buffering on v7x (3.2 TB/s HBM -> DMA issue latency matters).
    n_buf_x = 3 if gen == "v7" else 2
    n_buf_out = 2

    # Explicit scoped-VMEM budget from the actual buffer footprint (+ slack).
    blk_bytes = tb * tn * itemsize
    pe_bytes = 2 * 8 * (pl.cdiv(tn, 128) * 128) * itemsize
    footprint = (n_buf_x + n_buf_out) * blk_bytes + pe_bytes
    vmem_limit = int(min(48 << 20, max(16 << 20, footprint + (8 << 20))))

    out_flat = pl.pallas_call(
        _pe_add_kernel,
        out_shape=jax.ShapeDtypeStruct((B, N), x.dtype),
        grid_spec=pltpu.PrefetchScalarGridSpec(
            num_scalar_prefetch=0,
            grid=grid,
            in_specs=[
                _spec((tb, tn), lambda j, i: (i, j), n_buf_x),   # x tile
                pl.BlockSpec((1, tn), lambda j, i: (0, j)),      # shared PE tile
            ],
            out_specs=_spec((tb, tn), lambda j, i: (i, j), n_buf_out),
        ),
        compiler_params=pltpu.CompilerParams(
            dimension_semantics=("parallel", "parallel"),
            vmem_limit_bytes=vmem_limit,
        ),
        # In-place add when the caller no longer needs x: removes one (B,S,D)
        # HBM allocation (read+write traffic unchanged, peak HBM pressure down).
        input_output_aliases=({0: 0} if donate_x else {}),
    )(xf, pef)

    return out_flat.reshape(B, S, D)


if __name__ == "__main__":
    MAX_LEN = 100
    key = jax.random.PRNGKey(0)

    # 1) Module-sized example (B=2, S=8, D=32): takes the tiny-input fast path.
    B, S, D = 2, 8, 32
    x = jax.random.normal(key, (B, S, D), dtype=jnp.float32)
    pe = make_positional_encoding(D, MAX_LEN)
    out = jax.block_until_ready(positional_encoding_forward(x, pe))
    ref = x + pe[None, :S, :]
    assert out.shape == (B, S, D) and out.dtype == x.dtype
    assert jnp.allclose(out, ref, atol=1e-6, rtol=1e-6)

    # 2) Same shape, kernel path forced (exercises the Pallas call itself).
    out_k = jax.block_until_ready(
        positional_encoding_forward(x, pe, use_fast_path=False))
    assert jnp.allclose(out_k, ref, atol=1e-6, rtol=1e-6)

    # 3) Odd d_model / non-128-multiple row (full-extent lane tile, bounded).
    D2 = 31
    x2 = jax.random.normal(jax.random.PRNGKey(1), (B, S, D2), dtype=jnp.float32)
    pe2 = make_positional_encoding(D2, MAX_LEN)
    out2 = jax.block_until_ready(
        positional_encoding_forward(x2, pe2, use_fast_path=False))
    assert jnp.allclose(out2, x2 + pe2[None, :S, :], atol=1e-6, rtol=1e-6)

    # 4) Ragged lane AND batch tiles via cdiv grid (small byte target to force
    #    multi-tile behaviour at a small shape).
    B3, S3, D3 = 12, 40, 25                      # N = 1000 (not a 128 multiple)
    x3 = jax.random.normal(jax.random.PRNGKey(2), (B3, S3, D3), dtype=jnp.float32)
    pe3 = make_positional_encoding(D3, MAX_LEN)
    out3 = jax.block_until_ready(
        positional_encoding_forward(x3, pe3, use_fast_path=False,
                                    target_block_bytes=16 * 1024))
    assert jnp.allclose(out3, x3 + pe3[None, :S3, :], atol=1e-6, rtol=1e-6)

    # 5) bf16 activations (sublane_mult = 16 path; pe cast to bf16 in-kernel).
    B4, S4, D4 = 4, 16, 64
    x4 = jax.random.normal(jax.random.PRNGKey(3), (B4, S4, D4)).astype(jnp.bfloat16)
    pe4 = make_positional_encoding(D4, MAX_LEN)
    out4 = jax.block_until_ready(
        positional_encoding_forward(x4, pe4, use_fast_path=False))
    ref4 = x4 + pe4[None, :S4, :].astype(jnp.bfloat16)
    assert out4.dtype == jnp.bfloat16
    assert jnp.allclose(out4.astype(jnp.float32), ref4.astype(jnp.float32),
                        atol=1e-2, rtol=1e-2)

    print("KERNEL_OK")
</pallas_src>

<mosaic_0001>
module attributes {stable_mosaic.version = 11 : i64} {
  func.func @_pe_add_kernel(%arg0: i32, %arg1: i32, %arg2: memref<2x256xf32, #tpu.memory_space<vmem>>, %arg3: memref<1x256xf32, #tpu.memory_space<vmem>>, %arg4: memref<2x256xf32, #tpu.memory_space<vmem>>) attributes {dimension_semantics = [#tpu.dimension_semantics<parallel>, #tpu.dimension_semantics<parallel>], iteration_bounds = array<i64: 1, 1>, scalar_prefetch = 0 : i64, scratch_operands = 0 : i64, tpu.core_type = #tpu.core_type<tc>, window_params = [{transform_indices = @transform_0, window_bounds = array<i64: 2, 256>}, {transform_indices = @transform_1, window_bounds = array<i64: 1, 256>}, {transform_indices = @transform_2, window_bounds = array<i64: 2, 256>}]} {
    %c0 = arith.constant 0 : index
    %c0_0 = arith.constant 0 : index
    %0 = vector.load %arg2[%c0, %c0_0] : memref<2x256xf32, #tpu.memory_space<vmem>>, vector<2x256xf32>
    %c0_1 = arith.constant 0 : index
    %c0_2 = arith.constant 0 : index
    %1 = vector.load %arg3[%c0_1, %c0_2] : memref<1x256xf32, #tpu.memory_space<vmem>>, vector<1x256xf32>
    %2 = vector.broadcast %1 : vector<1x256xf32> to vector<2x256xf32>
    %3 = arith.addf %0, %2 : vector<2x256xf32>
    %c0_3 = arith.constant 0 : index
    %c0_4 = arith.constant 0 : index
    %4 = vector.load %arg4[%c0_3, %c0_4] : memref<2x256xf32, #tpu.memory_space<vmem>>, vector<2x256xf32>
    tpu.vector_store %arg4[%c0_3, %c0_4], %3 {strides = array<i32>} : memref<2x256xf32, #tpu.memory_space<vmem>>, vector<2x256xf32>,
    return
  }
  func.func @transform_0(%arg0: i32, %arg1: i32) -> (i32, i32) {
    %c0_i32 = arith.constant 0 : i32
    return %arg1, %arg0 : i32, i32
  }
  func.func @transform_1(%arg0: i32, %arg1: i32) -> (i32, i32) {
    %c0_i32 = arith.constant 0 : i32
    %c0_i32_0 = arith.constant 0 : i32
    return %c0_i32, %arg0 : i32, i32
  }
  func.func @transform_2(%arg0: i32, %arg1: i32) -> (i32, i32) {
    %c0_i32 = arith.constant 0 : i32
    return %arg1, %arg0 : i32, i32
  }
}

</mosaic_0001>

<bundles_post_ra>
// kernel: tpu_custom_call.1
= control target key start
LH: loop header
LB: loop body
LE: loop exit
PB: predicated region body
PF: predicated region fallthrough
CT: control target
= control target key end

     0   :  { %7 = vsyncpa [#allocation3], 0  ;;  %s177_s0 = inlined_call_operand.hbm [shape: f32[2,256], index: 0, kind: input, shape index: {}]   ;;  %s178_s1 = inlined_call_operand.hbm [shape: f32[1,256], index: 1, kind: input, shape index: {}]   ;;  %s179_s2 = inlined_call_operand.hbm [shape: f32[2,256], index: 2, kind: output, shape index: {}]  }
   0x1   :  { %8 = vsyncpa [#allocation6], 0 }
   0x2   :  { %9 = vsyncpa [#allocation4], 0  ;;  %s15_s11 = sshll.u32 %s177_s0, 4  ;;  %s150_s12 = smov [#allocation2]   ;;  %s16_s11 = int_to_ptr.hbm [resolvable:$true] %s15_s11 }
   0x3   :  { %s17_s13 = sshll.u32 %s150_s12, 4  ;;  %s26_s16 = sshll.u32 %s178_s1, 4  ;;  %s18_s13 = int_to_ptr.vmem [resolvable:$true] %s17_s13  ;;  %s27_s16 = int_to_ptr.hbm [resolvable:$true] %s26_s16 }
   0x4   :  { %20 = dma.hbm_to_vmem [thread:$0]  %s16_s11, 64, %s18_s13, [#allocation3]  }
   0x5   :  { %s151_s17 = smov [#allocation5]  }
   0x6   :  { %s28_s18 = sshll.u32 %s151_s17, 4  ;;  %s29_s18 = int_to_ptr.vmem [resolvable:$true] %s28_s18 }
   0x7   :  { %31 = dma.hbm_to_vmem [thread:$0]  %s27_s16, 32, %s29_s18, [#allocation6]  }
   0x8   :  { %144 = dma.done.wait [#allocation3], 64  }
   0x9   :  { %145 = vsyncadd [#allocation3], 4294967232 }
   0xa   :  { %146 = dma.done.wait [#allocation6], 32  }
   0xb   :  { %147 = vsyncadd [#allocation6], 4294967264  ;;  %v41_v0 = vld [vmem:[#allocation5] sm:$0x3]  ;;  %vm46_vm0 = vcmask 1041408   ;;  %s152_s0 = smov [#allocation7]  }
   0xc   :  { %v43_v1 = vperm.slane %v41_v0, 0  ;;  %v44_v2 = vperm.slane %v41_v0, 1  ;;  %v40_v3 = vld [vmem:[#allocation2] sm:$0xf]  ;;  %s56_s19 = sshll.u32 %s152_s0, 4  ;;  %s58_s21 = sshll.u32 %s179_s2, 4  ;;  %s57_s19 = int_to_ptr.vmem [resolvable:$true] %s56_s19  ;;  %s59_s21 = int_to_ptr.hbm [resolvable:$true] %s58_s21 }
   0xe   :  { %v45_v4 = vrot.slane %v44_v2, 6 }
  0x10   :  { %v47_v5 = vsel %vm46_vm0, %v43_v1, %v45_v4 }
  0x11   :  { %v49_v6 = vadd.f32 %v47_v5, %v40_v3 }
  0x13   :  { %50 = vst [vmem:[#allocation7] sm:$0xf] %v49_v6 }
  0x14   :  { %61 = dma.vmem_to_hbm [thread:$0]  %s57_s19, 64, %s59_s21, [#allocation4]  }
  0x15   :  { %148 = dma.done.wait [#allocation4], 64  }
  0x16   :  { %149 = vsyncadd [#allocation4], 4294967232 }
  0x17   :  { %66 = vsyncpa [#allocation3], 1 }
  0x18   :  { %67 = vsyncpa [#allocation6], 1 }
  0x19   :  { %68 = vsyncpa [#allocation4], 1 }

</bundles_post_ra>
